<compile_context>
chip_gen: v6e
topology: v6e:2x2x1
jax: 0.10.0
libtpu: 0.0.40
codegen_flags: <defaults>
</compile_context>

<pallas_src>
import math

import jax
import jax.numpy as jnp
from jax.experimental import pallas as pl
from jax.experimental.pallas import tpu as pltpu

LN_EPS = 1e-5            # torch.nn.LayerNorm default
_K_IN = 6                # box feature dim
_LANES = 128             # TPU lane width
_MAX_PACKED_LANES = 512  # cap on packed row width (keeps seg matrix tiny)
_MAX_TILE_M = 8192       # rows per grid step, upper cap


def _round_up(x, m):
    return (x + m - 1) // m * m


def _vmem_budget():
    """(tile-footprint budget, vmem_limit_bytes), generation-aware."""
    try:
        cap = pltpu.get_tpu_info().vmem_capacity_bytes
    except Exception:
        cap = 64 * 1024 * 1024                      # conservative (v7x-like)
    if cap >= 128 * 1024 * 1024:                    # v5e / v6e: 128 MiB physical
        return 72 * 1024 * 1024, 96 * 1024 * 1024
    return 32 * 1024 * 1024, 48 * 1024 * 1024       # v7x: 64 MiB physical


def _pick_tile_m(rows, row_bytes, budget):
    """Rows per grid step: large enough to amortize the ~0.35us/step overhead,
    small enough that double-buffered tiles + f32 intermediates fit the VMEM
    budget, and leaving >= ~8 grid steps so v7x can shard across 2 TCs."""
    t = (budget // max(row_bytes, 1)) // 8 * 8
    t = max(8, min(_MAX_TILE_M, t))
    t = min(t, _round_up(pl.cdiv(rows, 8), 8))
    if t >= rows:
        return rows                                  # single full-extent block
    return max(8, t)


def _box_kernel_plain(x_ref, w_ref, p_ref, o_ref):
    # x_ref: (TM, 6)  w_ref: (6, H)  p_ref: (3, H) = [bias; gamma; beta]
    x = x_ref[...].astype(jnp.float32)
    y = jnp.dot(x, w_ref[...], preferred_element_type=jnp.float32)
    y = y + p_ref[0:1, :]
    mean = jnp.mean(y, axis=-1, keepdims=True)
    c = y - mean
    var = jnp.mean(c * c, axis=-1, keepdims=True)    # biased, as torch
    inv = jax.lax.rsqrt(var + LN_EPS)
    o_ref[...] = (c * inv * p_ref[1:2, :] + p_ref[2:3, :]).astype(o_ref.dtype)


def _box_kernel_packed(x_ref, w_ref, p_ref, s_ref, o_ref):
    # g tokens packed per lane row; per-token LayerNorm is a segmented
    # reduction done as a matmul with a block-diagonal averaging matrix (MXU
    # has slack here; stores stay full-lane).
    # x_ref: (TM, g*6)  w_ref: (g*6, L)  p_ref: (3, L)  s_ref: (L, L)  o_ref: (TM, L)
    x = x_ref[...].astype(jnp.float32)
    y = jnp.dot(x, w_ref[...], preferred_element_type=jnp.float32)
    y = y + p_ref[0:1, :]
    seg = s_ref[...]
    mean = jnp.dot(y, seg, preferred_element_type=jnp.float32)       # group mean, broadcast
    c = y - mean
    var = jnp.dot(c * c, seg, preferred_element_type=jnp.float32)    # biased group var
    inv = jax.lax.rsqrt(var + LN_EPS)
    o_ref[...] = (c * inv * p_ref[1:2, :] + p_ref[2:3, :]).astype(o_ref.dtype)


def box_embedding(box_feat, weight, bias, gamma, beta, *, out_dtype=jnp.bfloat16):
    """Fused Linear(6, H) + LayerNorm(H).

    box_feat: (..., 6); weight: (H, 6) (torch layout); bias/gamma/beta: (H,).
    Default output dtype is bf16 (writeback-bound kernel); pass
    out_dtype=jnp.float32 for exact torch-f32 parity.  Matmul accumulation and
    LayerNorm statistics are always f32.
    """
    orig_shape = box_feat.shape
    hidden = weight.shape[0]
    m = math.prod(orig_shape[:-1])
    x2d = box_feat.reshape(m, _K_IN)                 # metadata-only, no copy / cast

    w_t = weight.T.astype(jnp.float32)               # (6, H)   -- tiny, host-side ok
    params = jnp.stack([bias, gamma, beta]).astype(jnp.float32)      # (3, H)

    tile_budget, vmem_limit = _vmem_budget()
    cp = pltpu.CompilerParams(
        dimension_semantics=("parallel",),           # shard M across TCs on v7x
        vmem_limit_bytes=vmem_limit,
    )

    in_bytes = jnp.dtype(x2d.dtype).itemsize
    out_bytes = jnp.dtype(out_dtype).itemsize

    lanes = math.lcm(hidden, _LANES)
    use_packed = (hidden % _LANES != 0) and (lanes <= _MAX_PACKED_LANES)

    if use_packed:
        g = lanes // hidden
        if m % g:                                    # group-align -> reshape stays free
            x2d = jnp.pad(x2d, ((0, g - m % g), (0, 0)))
        rows = x2d.shape[0] // g
        x_in = x2d.reshape(rows, g * _K_IN)          # contiguous -> free reshape

        # block-diagonal weight: token slot j's 6 features -> its H output lanes
        w_blk = jnp.kron(jnp.eye(g, dtype=jnp.float32), w_t)                 # (g*6, L)
        params_in = jnp.tile(params, (1, g))                                  # (3, L)
        # block-diagonal averaging matrix for the segmented LN reduction
        seg = jnp.kron(jnp.eye(g, dtype=jnp.float32),
                       jnp.full((hidden, hidden), 1.0 / hidden, jnp.float32))  # (L, L)

        row_bytes = (2 * max(_LANES, g * _K_IN) * in_bytes    # x tile, double-buffered
                     + 2 * lanes * out_bytes                  # out tile, double-buffered
                     + 4 * lanes * 4)                         # f32 intermediates headroom
        tile_m = _pick_tile_m(rows, row_bytes, tile_budget)

        out = pl.pallas_call(
            _box_kernel_packed,
            out_shape=jax.ShapeDtypeStruct((rows, lanes), out_dtype),
            grid=(pl.cdiv(rows, tile_m),),
            in_specs=[
                pl.BlockSpec((tile_m, g * _K_IN), lambda i: (i, 0)),
                pl.BlockSpec((g * _K_IN, lanes), lambda i: (0, 0)),
                pl.BlockSpec((3, lanes), lambda i: (0, 0)),
                pl.BlockSpec((lanes, lanes), lambda i: (0, 0)),
            ],
            out_specs=pl.BlockSpec((tile_m, lanes), lambda i: (i, 0)),
            compiler_params=cp,
        )(x_in, w_blk, params_in, seg)
        out = out.reshape(rows * g, hidden)[:m]
    else:
        # H % 128 == 0 (already lane-dense), or an awkward H where lcm-packing
        # would blow up the seg matrix (masked-store fallback).
        rows = m
        h_vmem = _round_up(hidden, _LANES)
        row_bytes = (2 * _LANES * in_bytes
                     + 2 * h_vmem * out_bytes
                     + 4 * h_vmem * 4)
        tile_m = _pick_tile_m(rows, row_bytes, tile_budget)

        out = pl.pallas_call(
            _box_kernel_plain,
            out_shape=jax.ShapeDtypeStruct((rows, hidden), out_dtype),
            grid=(pl.cdiv(rows, tile_m),),
            in_specs=[
                pl.BlockSpec((tile_m, _K_IN), lambda i: (i, 0)),
                pl.BlockSpec((_K_IN, hidden), lambda i: (0, 0)),
                pl.BlockSpec((3, hidden), lambda i: (0, 0)),
            ],
            out_specs=pl.BlockSpec((tile_m, hidden), lambda i: (i, 0)),
            compiler_params=cp,
        )(x2d, w_t, params)

    return out.reshape(*orig_shape[:-1], hidden)


if __name__ == "__main__":
    key = jax.random.PRNGKey(0)
    k_x, k_w, k_b, k_g, k_be = jax.random.split(key, 5)

    batch, seq, hidden_dim = 2, 8, 32

    box_feat = jax.random.normal(k_x, (batch, seq, 6), dtype=jnp.float32)
    weight = jax.random.normal(k_w, (hidden_dim, 6), dtype=jnp.float32) * 0.1  # torch (out, in)
    bias = jax.random.normal(k_b, (hidden_dim,), dtype=jnp.float32) * 0.1
    gamma = jnp.ones((hidden_dim,), dtype=jnp.float32) + 0.05 * jax.random.normal(
        k_g, (hidden_dim,), dtype=jnp.float32)
    beta = 0.05 * jax.random.normal(k_be, (hidden_dim,), dtype=jnp.float32)

    # f32 output: exact torch-semantics parity.
    out_f32 = jax.block_until_ready(
        box_embedding(box_feat, weight, bias, gamma, beta, out_dtype=jnp.float32))
    # bf16 output (default fast path; halves the dominant writeback stream).
    out_bf16 = jax.block_until_ready(
        box_embedding(box_feat, weight, bias, gamma, beta))

    # Reference (same semantics as the torch module).
    y_ref = box_feat @ weight.T + bias
    mu = jnp.mean(y_ref, axis=-1, keepdims=True)
    var = jnp.mean((y_ref - mu) ** 2, axis=-1, keepdims=True)
    ref = (y_ref - mu) / jnp.sqrt(var + LN_EPS) * gamma + beta

    assert out_f32.shape == (batch, seq, hidden_dim)
    assert jnp.allclose(out_f32, ref, atol=1e-4, rtol=1e-4), "f32 mismatch vs reference"
    assert out_bf16.dtype == jnp.bfloat16
    assert jnp.allclose(out_bf16.astype(jnp.float32), ref, atol=3e-2, rtol=3e-2), \
        "bf16 mismatch vs reference"

    print("KERNEL_OK")
</pallas_src>

<mosaic_0001>
module attributes {stable_mosaic.version = 11 : i64} {
  func.func @_box_kernel_packed(%arg0: i32, %arg1: memref<4x24xf32, #tpu.memory_space<vmem>>, %arg2: memref<24x128xf32, #tpu.memory_space<vmem>>, %arg3: memref<3x128xf32, #tpu.memory_space<vmem>>, %arg4: memref<128x128xf32, #tpu.memory_space<vmem>>, %arg5: memref<4x128xf32, #tpu.memory_space<vmem>>) attributes {dimension_semantics = [#tpu.dimension_semantics<parallel>], iteration_bounds = array<i64: 1>, scalar_prefetch = 0 : i64, scratch_operands = 0 : i64, tpu.core_type = #tpu.core_type<tc>, window_params = [{transform_indices = @transform_0, window_bounds = array<i64: 4, 24>}, {pipeline_mode = #tpu.pipeline_mode<synchronous>, transform_indices = @transform_1, window_bounds = array<i64: 24, 128>}, {pipeline_mode = #tpu.pipeline_mode<synchronous>, transform_indices = @transform_2, window_bounds = array<i64: 3, 128>}, {pipeline_mode = #tpu.pipeline_mode<synchronous>, transform_indices = @transform_3, window_bounds = array<i64: 128, 128>}, {transform_indices = @transform_4, window_bounds = array<i64: 4, 128>}]} {
    %c0 = arith.constant 0 : index
    %c0_0 = arith.constant 0 : index
    %0 = vector.load %arg1[%c0, %c0_0] : memref<4x24xf32, #tpu.memory_space<vmem>>, vector<4x24xf32>
    %c0_1 = arith.constant 0 : index
    %c0_2 = arith.constant 0 : index
    %1 = vector.load %arg2[%c0_1, %c0_2] : memref<24x128xf32, #tpu.memory_space<vmem>>, vector<24x128xf32>
    %cst = arith.constant dense<0.000000e+00> : vector<4x128xf32>
    %2 = tpu.matmul %0, %1, %cst {dimension_numbers = #tpu.dot_dimension_numbers<[1], [0], [0], [1], [0, 0, 1, 1], [], []>} : vector<4x24xf32>, vector<24x128xf32>, vector<4x128xf32> -> vector<4x128xf32>
    %c0_3 = arith.constant 0 : index
    %c0_4 = arith.constant 0 : index
    %3 = vector.load %arg3[%c0_3, %c0_4] : memref<3x128xf32, #tpu.memory_space<vmem>>, vector<1x128xf32>
    %4 = vector.broadcast %3 : vector<1x128xf32> to vector<4x128xf32>
    %5 = arith.addf %2, %4 : vector<4x128xf32>
    %c0_5 = arith.constant 0 : index
    %c0_6 = arith.constant 0 : index
    %6 = vector.load %arg4[%c0_5, %c0_6] : memref<128x128xf32, #tpu.memory_space<vmem>>, vector<128x128xf32>
    %cst_7 = arith.constant dense<0.000000e+00> : vector<4x128xf32>
    %7 = tpu.matmul %5, %6, %cst_7 {dimension_numbers = #tpu.dot_dimension_numbers<[1], [0], [0], [1], [0, 0, 1, 1], [], []>} : vector<4x128xf32>, vector<128x128xf32>, vector<4x128xf32> -> vector<4x128xf32>
    %8 = arith.subf %5, %7 : vector<4x128xf32>
    %9 = arith.mulf %8, %8 : vector<4x128xf32>
    %cst_8 = arith.constant dense<0.000000e+00> : vector<4x128xf32>
    %10 = tpu.matmul %9, %6, %cst_8 {dimension_numbers = #tpu.dot_dimension_numbers<[1], [0], [0], [1], [0, 0, 1, 1], [], []>} : vector<4x128xf32>, vector<128x128xf32>, vector<4x128xf32> -> vector<4x128xf32>
    %cst_9 = arith.constant 9.99999974E-6 : f32
    %11 = vector.broadcast %cst_9 : f32 to vector<4x128xf32>
    %12 = arith.addf %10, %11 : vector<4x128xf32>
    %13 = math.rsqrt %12 : vector<4x128xf32>
    %14 = arith.mulf %8, %13 : vector<4x128xf32>
    %c1 = arith.constant 1 : index
    %c0_10 = arith.constant 0 : index
    %15 = vector.load %arg3[%c1, %c0_10] : memref<3x128xf32, #tpu.memory_space<vmem>>, vector<1x128xf32>
    %16 = vector.broadcast %15 : vector<1x128xf32> to vector<4x128xf32>
    %17 = arith.mulf %14, %16 : vector<4x128xf32>
    %c2 = arith.constant 2 : index
    %c0_11 = arith.constant 0 : index
    %18 = vector.load %arg3[%c2, %c0_11] : memref<3x128xf32, #tpu.memory_space<vmem>>, vector<1x128xf32>
    %19 = vector.broadcast %18 : vector<1x128xf32> to vector<4x128xf32>
    %20 = arith.addf %17, %19 : vector<4x128xf32>
    %c0_12 = arith.constant 0 : index
    %c0_13 = arith.constant 0 : index
    %21 = vector.load %arg5[%c0_12, %c0_13] : memref<4x128xf32, #tpu.memory_space<vmem>>, vector<4x128xf32>
    tpu.vector_store %arg5[%c0_12, %c0_13], %20 {strides = array<i32>} : memref<4x128xf32, #tpu.memory_space<vmem>>, vector<4x128xf32>,
    return
  }
  func.func @transform_0(%arg0: i32) -> (i32, i32) {
    %c0_i32 = arith.constant 0 : i32
    %c0_i32_0 = arith.constant 0 : i32
    return %arg0, %c0_i32 : i32, i32
  }
  func.func @transform_1(%arg0: i32) -> (i32, i32) {
    %c0_i32 = arith.constant 0 : i32
    %c0_i32_0 = arith.constant 0 : i32
    %c0_i32_1 = arith.constant 0 : i32
    return %c0_i32, %c0_i32_0 : i32, i32
  }
  func.func @transform_2(%arg0: i32) -> (i32, i32) {
    %c0_i32 = arith.constant 0 : i32
    %c0_i32_0 = arith.constant 0 : i32
    %c0_i32_1 = arith.constant 0 : i32
    return %c0_i32, %c0_i32_0 : i32, i32
  }
  func.func @transform_3(%arg0: i32) -> (i32, i32) {
    %c0_i32 = arith.constant 0 : i32
    %c0_i32_0 = arith.constant 0 : i32
    %c0_i32_1 = arith.constant 0 : i32
    return %c0_i32, %c0_i32_0 : i32, i32
  }
  func.func @transform_4(%arg0: i32) -> (i32, i32) {
    %c0_i32 = arith.constant 0 : i32
    %c0_i32_0 = arith.constant 0 : i32
    return %arg0, %c0_i32 : i32, i32
  }
}

</mosaic_0001>

<bundles_post_ra>
// kernel: tpu_custom_call.1
= control target key start
LH: loop header
LB: loop body
LE: loop exit
PB: predicated region body
PF: predicated region fallthrough
CT: control target
= control target key end

     0   :  { %9 = vsyncpa [#allocation3], 0  ;;  %s678_s0 = inlined_call_operand.hbm [shape: f32[4,24], index: 0, kind: input, shape index: {}]   ;;  %s679_s1 = inlined_call_operand.hbm [shape: f32[24,128], index: 1, kind: input, shape index: {}]   ;;  %s680_s2 = inlined_call_operand.hbm [shape: f32[3,128], index: 2, kind: input, shape index: {}]   ;;  %s681_s3 = inlined_call_operand.hbm [shape: f32[128,128], index: 3, kind: input, shape index: {}]   ;;  %s682_s4 = inlined_call_operand.hbm [shape: f32[4,128], index: 4, kind: output, shape index: {}]  }
   0x1   :  { %10 = vsyncpa [#allocation6], 0 }
   0x2   :  { %11 = vsyncpa [#allocation9], 0 }
   0x3   :  { %12 = vsyncpa [#allocation4], 0  ;;  %s582_s15 = smov [#allocation5]  }
   0x4   :  { %s28_s16 = sshll.u32 %s582_s15, 4  ;;  %s29_s16 = int_to_ptr.vmem [resolvable:$true] %s28_s16 }
   0x5   :  { %s482_s17 = scalar_lea.vmem %s29_s16, 384  ;;  %p487_p1 = scmp.lt.s32.totalorder %s29_s16, %s29_s16 }
   0x6   :  { %p483_p0 = scmp.ne.s32.totalorder %s29_s16, %s482_s17  ;;  %p488_p2 = scmp.lt.s32.totalorder %s482_s17, %s482_s17 }
   0x8   :  { %p489_p3 = por %p488_p2, %p487_p1 }
   0xa   :  { %p490_p4 = pnand %p489_p3, %p483_p0 }
   0xc   :  { %493 = shalt.err (!%p490_p4)
}
   0xd   :  { %s583_s18 = smov 128   ;;  %s584_s19 = smov 8  }
   0xe   :  { %34 = dma.hbm_to_vmem [thread:$0]  %s679_s1, 384, %s29_s16, [#allocation6], %s583_s18, %s583_s18, %s584_s19  }
   0xf   :  { %s585_s22 = smov [#allocation2]   ;;  %s586_s24 = smov [#allocation7]  }
  0x10   :  { %s19_s23 = sshll.u32 %s585_s22, 4  ;;  %s41_s25 = sshll.u32 %s586_s24, 4  ;;  %s20_s23 = int_to_ptr.vmem [resolvable:$true] %s19_s23  ;;  %s42_s25 = int_to_ptr.vmem [resolvable:$true] %s41_s25 }
  0x11   :  { %s502_s26 = scalar_lea.vmem %s20_s23, 64  ;;  %p507_p6 = scmp.lt.s32.totalorder %s20_s23, %s20_s23 }
  0x12   :  { %p503_p5 = scmp.ne.s32.totalorder %s20_s23, %s502_s26  ;;  %p508_p7 = scmp.lt.s32.totalorder %s502_s26, %s502_s26 }
  0x14   :  { %p509_p8 = por %p508_p7, %p507_p6 }
  0x16   :  { %p510_p9 = pnand %p509_p8, %p503_p5 }
  0x18   :  { %513 = shalt.err (!%p510_p9)
}
  0x19   :  { %22 = dma.hbm_to_vmem [thread:$0]  %s678_s0, 64, %s20_s23, [#allocation3]  }
  0x1a   :  { %s522_s29 = scalar_lea.vmem %s42_s25, 64  ;;  %p527_p11 = scmp.lt.s32.totalorder %s42_s25, %s42_s25 }
  0x1b   :  { %p523_p10 = scmp.ne.s32.totalorder %s42_s25, %s522_s29  ;;  %p528_p12 = scmp.lt.s32.totalorder %s522_s29, %s522_s29 }
  0x1d   :  { %p529_p13 = por %p528_p12, %p527_p11 }
  0x1f   :  { %p530_p0 = pnand %p529_p13, %p523_p10 }
  0x21   :  { %533 = shalt.err (!%p530_p0)
}
  0x22   :  { %44 = dma.hbm_to_vmem [thread:$0]  %s680_s2, 64, %s42_s25, [#allocation6]  }
  0x23   :  { %s587_s5 = smov [#allocation8]  }
  0x24   :  { %s50_s6 = sshll.u32 %s587_s5, 4  ;;  %s51_s6 = int_to_ptr.vmem [resolvable:$true] %s50_s6 }
  0x25   :  { %s542_s7 = scalar_lea.vmem %s51_s6, 2048  ;;  %p547_p2 = scmp.lt.s32.totalorder %s51_s6, %s51_s6 }
  0x26   :  { %p543_p1 = scmp.ne.s32.totalorder %s51_s6, %s542_s7  ;;  %p548_p3 = scmp.lt.s32.totalorder %s542_s7, %s542_s7 }
  0x28   :  { %p549_p4 = por %p548_p3, %p547_p2 }
  0x2a   :  { %p550_p5 = pnand %p549_p4, %p543_p1 }
  0x2c   :  { %553 = shalt.err (!%p550_p5)
}
  0x2d   :  { %56 = dma.hbm_to_vmem [thread:$0]  %s681_s3, 2048, %s51_s6, [#allocation9], %s583_s18, %s583_s18, %s584_s19  }
  0x2e   :  { %574 = dma.done.wait [#allocation3], 64  }
  0x2f   :  { %575 = vsyncadd [#allocation3], 4294967232 }
  0x30   :  { %576 = dma.done.wait [#allocation6], 448  }
  0x31   :  { %577 = vsyncadd [#allocation6], 4294966848 }
  0x32   :  { %578 = dma.done.wait [#allocation9], 2048  }
  0x33   :  { %579 = vsyncadd [#allocation9], 4294965248  ;;  %v588_v0 = vmov 0.0   ;;  %vm589_vm0 = vmmov 0   ;;  %v72_v1 = vld [vmem:[#allocation5 + $0x10] sm:$0xff]  ;;  %v71_v2 = vld [vmem:[#allocation5 + $0x8] sm:$0xff] }
  0x34   :  { %384 = vmatprep.subr.mxu0 %v588_v0  ;;  %390 = vmatprep.mubr.msk.f32.mxu0 %vm589_vm0, %v588_v0  ;;  %v167_v3 = vld [vmem:[#allocation8 + $0x78] sm:$0xff]  ;;  %v166_v4 = vld [vmem:[#allocation8 + $0x70] sm:$0xff]  ;;  %v70_v5 = vld [vmem:[#allocation5] sm:$0xff]  ;;  %vm78_vm1 = vcmask 195584   ;;  %s590_s2 = smov [#allocation10]  }
  0x35   :  { %393 = vmatprep.subr.mxu1 %v588_v0  ;;  %425 = vmatprep.mubr.msk.f32.mxu1 %vm589_vm0, %v588_v0  ;;  %v69_v6 = vld [vmem:[#allocation2] sm:$0xf]  ;;  %v165_v7 = vld [vmem:[#allocation8 + $0x68] sm:$0xff]  ;;  %v163_v9 = vld [vmem:[#allocation8 + $0x58] sm:$0xff]  ;;  %s331_s3 = sshll.u32 %s590_s2, 4  ;;  %s332_s3 = int_to_ptr.vmem [resolvable:$true] %s331_s3 }
  0x36   :  { %385 = vmatpush3.msra.mxu0 %v72_v1  ;;  %394 = vmatpush3.msra.mxu1 %v167_v3  ;;  %v164_v8 = vld [vmem:[#allocation8 + $0x60] sm:$0xff]  ;;  %v162_v10 = vld [vmem:[#allocation8 + $0x50] sm:$0xff]  ;;  %v161_v11 = vld [vmem:[#allocation8 + $0x48] sm:$0xff]  ;;  %s554_s9 = scalar_lea.vmem %s332_s3, 64  ;;  %p559_p7 = scmp.lt.s32.totalorder %s332_s3, %s332_s3 }
  0x37   :  { %386 = vmatprep.subr.mxu0 %v588_v0  ;;  %395 = vmatprep.subr.mxu1 %v588_v0  ;;  %v160_v12 = vld [vmem:[#allocation8 + $0x40] sm:$0xff]  ;;  %v159_v13 = vld [vmem:[#allocation8 + $0x38] sm:$0xff]  ;;  %v158_v14 = vld [vmem:[#allocation8 + $0x30] sm:$0xff]  ;;  %p555_p6 = scmp.ne.s32.totalorder %s332_s3, %s554_s9  ;;  %p560_p8 = scmp.lt.s32.totalorder %s554_s9, %s554_s9 }
  0x38   :  { %387 = vmatpush3.msra.mxu0 %v71_v2  ;;  %396 = vmatpush3.msra.mxu1 %v166_v4  ;;  %v157_v15 = vld [vmem:[#allocation8 + $0x28] sm:$0xff]  ;;  %v156_v16 = vld [vmem:[#allocation8 + $0x20] sm:$0xff]  ;;  %v155_v17 = vld [vmem:[#allocation8 + $0x18] sm:$0xff] }
  0x39   :  { %388 = vmatprep.subr.mxu0 %v588_v0  ;;  %397 = vmatprep.subr.mxu1 %v588_v0  ;;  %v154_v18 = vld [vmem:[#allocation8 + $0x10] sm:$0xff]  ;;  %v153_v19 = vld [vmem:[#allocation8 + $0x8] sm:$0xff]  ;;  %v152_v20 = vld [vmem:[#allocation8] sm:$0xff]  ;;  %p561_p9 = por %p560_p8, %p559_p7 }
  0x3a   :  { %389 = vmatpush3.msra.mxu0 %v70_v5  ;;  %398 = vmatpush3.msra.mxu1 %v165_v7  ;;  %v342_v21 = vld [vmem:[#allocation7] ss:$0 sm:$0xff]  ;;  %v344_v33 = vld [vmem:[#allocation7 + $0x1] ss:$0 sm:$0xff]  ;;  %v345_v35 = vld [vmem:[#allocation7 + $0x2] ss:$0 sm:$0xff] }
  0x3b   :  { %391 = vmatmul.mubr.msk.f32.vlgmr.msra.gmra.mxu0 %vm78_vm1, %v69_v6  ;;  %399 = vmatprep.subr.mxu1 %v588_v0  ;;  %p562_p10 = pnand %p561_p9, %p555_p6 }
  0x3c   :  { %428 = vmatprep.subr.mxu0 %v588_v0  ;;  %400 = vmatpush3.msra.mxu1 %v164_v8 }
  0x3d   :  { %429 = vmatpush3.msra.mxu0 %v167_v3  ;;  %401 = vmatprep.subr.mxu1 %v588_v0 }
  0x3e   :  { %430 = vmatprep.subr.mxu0 %v588_v0  ;;  %402 = vmatpush3.msra.mxu1 %v163_v9 }
  0x3f   :  { %431 = vmatpush3.msra.mxu0 %v166_v4  ;;  %403 = vmatprep.subr.mxu1 %v588_v0 }
  0x40   :  { %432 = vmatprep.subr.mxu0 %v588_v0  ;;  %404 = vmatpush3.msra.mxu1 %v162_v10 }
  0x41   :  { %433 = vmatpush3.msra.mxu0 %v165_v7  ;;  %405 = vmatprep.subr.mxu1 %v588_v0 }
  0x42   :  { %434 = vmatprep.subr.mxu0 %v588_v0  ;;  %406 = vmatpush3.msra.mxu1 %v161_v11 }
  0x43   :  { %435 = vmatpush3.msra.mxu0 %v164_v8  ;;  %407 = vmatprep.subr.mxu1 %v588_v0 }
  0x44   :  { %436 = vmatprep.subr.mxu0 %v588_v0  ;;  %408 = vmatpush3.msra.mxu1 %v160_v12 }
  0x45   :  { %437 = vmatpush3.msra.mxu0 %v163_v9  ;;  %409 = vmatprep.subr.mxu1 %v588_v0 }
  0x46   :  { %438 = vmatprep.subr.mxu0 %v588_v0  ;;  %410 = vmatpush3.msra.mxu1 %v159_v13 }
  0x47   :  { %439 = vmatpush3.msra.mxu0 %v162_v10  ;;  %411 = vmatprep.subr.mxu1 %v588_v0 }
  0x48   :  { %440 = vmatprep.subr.mxu0 %v588_v0  ;;  %412 = vmatpush3.msra.mxu1 %v158_v14 }
  0x49   :  { %441 = vmatpush3.msra.mxu0 %v161_v11  ;;  %413 = vmatprep.subr.mxu1 %v588_v0 }
  0x4a   :  { %442 = vmatprep.subr.mxu0 %v588_v0  ;;  %414 = vmatpush3.msra.mxu1 %v157_v15 }
  0x4b   :  { %443 = vmatpush3.msra.mxu0 %v160_v12  ;;  %415 = vmatprep.subr.mxu1 %v588_v0 }
  0x4c   :  { %444 = vmatprep.subr.mxu0 %v588_v0  ;;  %416 = vmatpush3.msra.mxu1 %v156_v16 }
  0x4d   :  { %445 = vmatpush3.msra.mxu0 %v159_v13  ;;  %417 = vmatprep.subr.mxu1 %v588_v0 }
  0x4e   :  { %446 = vmatprep.subr.mxu0 %v588_v0  ;;  %418 = vmatpush3.msra.mxu1 %v155_v17 }
  0x4f   :  { %447 = vmatpush3.msra.mxu0 %v158_v14  ;;  %419 = vmatprep.subr.mxu1 %v588_v0 }
  0x50   :  { %448 = vmatprep.subr.mxu0 %v588_v0  ;;  %420 = vmatpush3.msra.mxu1 %v154_v18 }
  0x51   :  { %449 = vmatpush3.msra.mxu0 %v157_v15  ;;  %421 = vmatprep.subr.mxu1 %v588_v0 }
  0x52   :  { %450 = vmatprep.subr.mxu0 %v588_v0  ;;  %460 = vmatprep.mubr.msk.f32.mxu0 %vm589_vm0, %v588_v0 }
  0x53   :  { %451 = vmatpush3.msra.mxu0 %v156_v16  ;;  %422 = vmatpush3.msra.mxu1 %v153_v19 }
  0x54   :  { %452 = vmatprep.subr.mxu0 %v588_v0  ;;  %423 = vmatprep.subr.mxu1 %v588_v0 }
  0x55   :  { %453 = vmatpush3.msra.mxu0 %v155_v17  ;;  %424 = vmatpush3.msra.mxu1 %v152_v20 }
  0x56   :  { %454 = vmatprep.subr.mxu0 %v588_v0 }
  0x57   :  { %455 = vmatpush3.msra.mxu0 %v154_v18 }
  0x58   :  { %456 = vmatprep.subr.mxu0 %v588_v0 }
  0x59   :  { %457 = vmatpush3.msra.mxu0 %v153_v19 }
  0x5a   :  { %458 = vmatprep.subr.mxu0 %v588_v0 }
  0x5b   :  { %459 = vmatpush3.msra.mxu0 %v152_v20 }
  0xfb   :  { %v148_v22 = vpop.f32.mrf.mxu0 }
  0xfc   :  { %v149_v23 = vadd.f32 %v342_v21, %v148_v22 }
  0xfd   :  { %v392_v24 = vpop.f32.mrf.mxu0 }
  0xfe   :  { %426 = vmatmul.mubr.f32.vlgmr.msra.gmra.mxu1 %v149_v23 }
 0x1be   :  { %v234_v25 = vpop.f32.mrf.mxu1 }
 0x1bf   :  { %v238_v26 = vsub.f32 %v149_v23, %v234_v25 }
 0x1c0   :  { %v427_v27 = vpop.f32.mrf.mxu1 }
 0x1c1   :  { %v239_v28 = vmul.f32 %v238_v26, %v238_v26 }
 0x1c3   :  { %461 = vmatmul.mubr.f32.vlgmr.msra.gmra.mxu0 %v239_v28 }
 0x283   :  { %v306_v29 = vpop.f32.mrf.mxu0 }
 0x284   :  { %v307_v30 = vadd.f32 1e-05, %v306_v29 }
 0x285   :  { %v462_v31 = vpop.f32.mrf.mxu0 }
 0x286   :  { %472 = vrsqrt.f32 %v307_v30 }
 0x293   :  { %v473_v32 = vpop.eup %472 }
 0x294   :  { %v311_v34 = vmul.f32 %v473_v32, %v238_v26 }
 0x296   :  { %v317_v36 = vmul.f32 %v344_v33, %v311_v34 }
 0x298   :  { %v323_v37 = vadd.f32 %v345_v35, %v317_v36 }
 0x29a   :  { %324 = vst [vmem:[#allocation10] sm:$0xf] %v323_v37 }
 0x29b   :  { %565 = shalt.err (!%p562_p10)
}
 0x29c   :  { %334 = dma.vmem_to_hbm [thread:$0]  %s332_s3, 64, %s682_s4, [#allocation4]  }
 0x29d   :  { %580 = dma.done.wait [#allocation4], 64  }
 0x29e   :  { %581 = vsyncadd [#allocation4], 4294967232 }
 0x29f   :  { %338 = vsyncpa [#allocation3], 1 }
 0x2a0   :  { %339 = vsyncpa [#allocation6], 1 }
 0x2a1   :  { %340 = vsyncpa [#allocation9], 1 }
 0x2a2   :  { %341 = vsyncpa [#allocation4], 1 }

</bundles_post_ra>
